<compile_context>
chip_gen: v7x
topology: tpu7x:2x2x1
jax: 0.10.0
libtpu: 0.0.40
codegen_flags: <defaults>
</compile_context>

<pallas_src>
import jax
import jax.numpy as jnp
from jax.experimental import pallas as pl
from jax.experimental.pallas import tpu as pltpu

# Hyperparameters from the reference module's HP namespace.
# TODO(synk): HP.BOTTLENECK_EXPANSION_RATIO / HP.NONLIN are not given in the
# spec; assuming expansion ratio 4 and Tanh non-linearity.
BOTTLENECK_EXPANSION_RATIO = 4
USE_TANH = True

_SUBLANES = 8  # f32 sublane tile; pad the single embedding row to a full tile.


def _sine_mlp_kernel(val_ref, x_ref, w1e_ref, w1s_ref, b1_ref, w2_ref, b2_ref,
                     out_ref):
    """out = act(x @ W1e + val * W1s + b1) @ W2 + b2   (fused MLP, one tile)."""
    val = val_ref[0, 0]                                        # SMEM scalar
    h = jnp.dot(x_ref[...], w1e_ref[...],
                preferred_element_type=jnp.float32)            # (8, hidden)
    h = h + val * w1s_ref[...] + b1_ref[...]                   # + sine column + bias
    h = jnp.tanh(h) if USE_TANH else jnp.maximum(h, 0.0)
    y = jnp.dot(h, w2_ref[...],
                preferred_element_type=jnp.float32)            # (8, dim)
    out_ref[...] = (y + b2_ref[...]).astype(out_ref.dtype)


@jax.jit
def _sine_mlp_call(val_arr, embed, w1, b1, w2, b2):
    dim = embed.shape[-1]
    hidden = w1.shape[1]

    w1_embed = w1[:dim, :]                    # (dim, hidden): rows for `embed`
    w1_sine = w1[dim:, :]                     # (1, hidden):  row for the scalar
    # Broadcast the single row to a full sublane tile; row 0 carries the result.
    x_rows = jnp.broadcast_to(embed.reshape(1, dim), (_SUBLANES, dim))

    vmem = pl.BlockSpec(memory_space=pltpu.MemorySpace.VMEM)
    out = pl.pallas_call(
        _sine_mlp_kernel,
        out_shape=jax.ShapeDtypeStruct((_SUBLANES, dim), embed.dtype),
        in_specs=[pl.BlockSpec(memory_space=pltpu.MemorySpace.SMEM)]  # val
                 + [vmem] * 6,                                        # tensors
        out_specs=vmem,
    )(val_arr, x_rows, w1_embed, w1_sine,
      b1.reshape(1, hidden), w2, b2.reshape(1, dim))
    return out[0]


def sine_embellisher(sine: int, embed: jax.Array, params: dict,
                     effective_max: int) -> jax.Array:
    """Pallas equivalent of SineEmbellisher.forward.

    params use input-major layouts (transpose of torch.nn.Linear.weight):
      'w1': (dim + 1, hidden), 'b1': (hidden,), 'w2': (hidden, dim), 'b2': (dim,)
    """
    # Python-level branch, exactly as in the torch module (`sine` is a plain int).
    if sine == 255:
        sine_float = float(effective_max)
    else:
        sine_float = float(sine)
    val = sine_float / float(effective_max)

    val_arr = jnp.full((1, 1), val, dtype=jnp.float32)
    return _sine_mlp_call(val_arr, embed, params["w1"], params["b1"],
                          params["w2"], params["b2"])


if __name__ == "__main__":
    key = jax.random.PRNGKey(0)
    dim = 32
    effective_max = 100
    hidden = dim * BOTTLENECK_EXPANSION_RATIO // 2   # 64

    k1, k2, k3, k4, k5 = jax.random.split(key, 5)
    embed = jax.random.normal(k1, (dim,), dtype=jnp.float32)
    params = {
        "w1": 0.1 * jax.random.normal(k2, (dim + 1, hidden), dtype=jnp.float32),
        "b1": 0.1 * jax.random.normal(k3, (hidden,), dtype=jnp.float32),
        "w2": 0.1 * jax.random.normal(k4, (hidden, dim), dtype=jnp.float32),
        "b2": 0.1 * jax.random.normal(k5, (dim,), dtype=jnp.float32),
    }

    def reference(sine_val: int) -> jax.Array:
        v = (float(effective_max) if sine_val == 255 else float(sine_val)) \
            / float(effective_max)
        x = jnp.concatenate([embed, jnp.array([v], dtype=embed.dtype)])
        h = x @ params["w1"] + params["b1"]
        h = jnp.tanh(h) if USE_TANH else jnp.maximum(h, 0.0)
        return h @ params["w2"] + params["b2"]

    ok = True
    for sine in (3, 255):   # exercise both sides of the `sine == 255` branch
        out = jax.block_until_ready(
            sine_embellisher(sine, embed, params, effective_max))
        ref = reference(sine)
        assert out.shape == (dim,)
        assert out.dtype == embed.dtype
        ok &= bool(jnp.allclose(out, ref, atol=1e-5, rtol=1e-5))
    assert ok, "kernel result mismatch vs pure-JAX reference"
    print("KERNEL_OK")
</pallas_src>

<mosaic_0001>
module attributes {stable_mosaic.version = 11 : i64} {
  func.func @_sine_mlp_kernel(%arg0: memref<1x1xf32, #tpu.memory_space<smem>>, %arg1: memref<8x32xf32, #tpu.memory_space<vmem>>, %arg2: memref<32x64xf32, #tpu.memory_space<vmem>>, %arg3: memref<1x64xf32, #tpu.memory_space<vmem>>, %arg4: memref<1x64xf32, #tpu.memory_space<vmem>>, %arg5: memref<64x32xf32, #tpu.memory_space<vmem>>, %arg6: memref<1x32xf32, #tpu.memory_space<vmem>>, %arg7: memref<8x32xf32, #tpu.memory_space<vmem>>) attributes {dimension_semantics = [], scalar_prefetch = 0 : i64, scratch_operands = 0 : i64, tpu.core_type = #tpu.core_type<tc>} {
    %c0 = arith.constant 0 : index
    %c0_0 = arith.constant 0 : index
    %0 = memref.load %arg0[%c0, %c0_0] : memref<1x1xf32, #tpu.memory_space<smem>>
    %c0_1 = arith.constant 0 : index
    %c0_2 = arith.constant 0 : index
    %1 = vector.load %arg1[%c0_1, %c0_2] : memref<8x32xf32, #tpu.memory_space<vmem>>, vector<8x32xf32>
    %c0_3 = arith.constant 0 : index
    %c0_4 = arith.constant 0 : index
    %2 = vector.load %arg2[%c0_3, %c0_4] : memref<32x64xf32, #tpu.memory_space<vmem>>, vector<32x64xf32>
    %cst = arith.constant dense<0.000000e+00> : vector<8x64xf32>
    %3 = tpu.matmul %1, %2, %cst {dimension_numbers = #tpu.dot_dimension_numbers<[1], [0], [0], [1], [0, 0, 1, 1], [], []>} : vector<8x32xf32>, vector<32x64xf32>, vector<8x64xf32> -> vector<8x64xf32>
    %c0_5 = arith.constant 0 : index
    %c0_6 = arith.constant 0 : index
    %4 = vector.load %arg3[%c0_5, %c0_6] : memref<1x64xf32, #tpu.memory_space<vmem>>, vector<1x64xf32>
    %5 = vector.broadcast %0 : f32 to vector<1x64xf32>
    %6 = arith.mulf %5, %4 : vector<1x64xf32>
    %7 = vector.broadcast %6 : vector<1x64xf32> to vector<8x64xf32>
    %8 = arith.addf %3, %7 : vector<8x64xf32>
    %c0_7 = arith.constant 0 : index
    %c0_8 = arith.constant 0 : index
    %9 = vector.load %arg4[%c0_7, %c0_8] : memref<1x64xf32, #tpu.memory_space<vmem>>, vector<1x64xf32>
    %10 = vector.broadcast %9 : vector<1x64xf32> to vector<8x64xf32>
    %11 = arith.addf %8, %10 : vector<8x64xf32>
    %12 = math.tanh %11 : vector<8x64xf32>
    %c0_9 = arith.constant 0 : index
    %c0_10 = arith.constant 0 : index
    %13 = vector.load %arg5[%c0_9, %c0_10] : memref<64x32xf32, #tpu.memory_space<vmem>>, vector<64x32xf32>
    %cst_11 = arith.constant dense<0.000000e+00> : vector<8x32xf32>
    %14 = tpu.matmul %12, %13, %cst_11 {dimension_numbers = #tpu.dot_dimension_numbers<[1], [0], [0], [1], [0, 0, 1, 1], [], []>} : vector<8x64xf32>, vector<64x32xf32>, vector<8x32xf32> -> vector<8x32xf32>
    %c0_12 = arith.constant 0 : index
    %c0_13 = arith.constant 0 : index
    %15 = vector.load %arg6[%c0_12, %c0_13] : memref<1x32xf32, #tpu.memory_space<vmem>>, vector<1x32xf32>
    %16 = vector.broadcast %15 : vector<1x32xf32> to vector<8x32xf32>
    %17 = arith.addf %14, %16 : vector<8x32xf32>
    %c0_14 = arith.constant 0 : index
    %c0_15 = arith.constant 0 : index
    %18 = vector.load %arg7[%c0_14, %c0_15] : memref<8x32xf32, #tpu.memory_space<vmem>>, vector<8x32xf32>
    tpu.vector_store %arg7[%c0_14, %c0_15], %17 {strides = array<i32>} : memref<8x32xf32, #tpu.memory_space<vmem>>, vector<8x32xf32>,
    return
  }
}

</mosaic_0001>

<bundles_post_ra>
// kernel: _sine_mlp_call.1
= control target key start
LH: loop header
LB: loop body
LE: loop exit
PB: predicated region body
PF: predicated region fallthrough
CT: control target
= control target key end

     0   :  { %v290_v0 = vmov 0.0|0.0   ;;  %vm291_vm0 = vmmov 0   ;;  %v292_v4 = vmov 0.0   ;;  %vm42_vm1 = vcmask 261120   ;;  %s389_s2 = inlined_call_operand.vmem [shape: f32[32,64], index: 2, kind: input, shape index: {}]   ;;  %s390_s1 = inlined_call_operand.vmem [shape: f32[8,32], index: 1, kind: input, shape index: {}]   ;;  %s391_s5 = inlined_call_operand.vmem [shape: f32[64,32], index: 5, kind: input, shape index: {}]   ;;  %s392_s0 = inlined_call_operand.<no memory space> [shape: f32[1,1], index: 0, kind: input, shape index: {}]   ;;  %s393_s3 = inlined_call_operand.vmem [shape: f32[1,64], index: 3, kind: input, shape index: {}]   ;;  %s394_s4 = inlined_call_operand.vmem [shape: f32[1,64], index: 4, kind: input, shape index: {}]   ;;  %s395_s6 = inlined_call_operand.vmem [shape: f32[1,32], index: 6, kind: input, shape index: {}]   ;;  %s396_s7 = inlined_call_operand.vmem [shape: f32[8,32], index: 7, kind: output, shape index: {}]  }
   0x1   :  { %267 = vmatprep.subr.bf16.mxu0 %v290_v0  ;;  %v29_v1 = vld [vmem:[%s389_s2] sm:$0xff]  ;;  %v30_v2 = vld [vmem:[%s389_s2 + $0x8] sm:$0xff]  ;;  %v31_v3 = vld [vmem:[%s389_s2 + $0x10] sm:$0xff]  ;;  %245 = vmatprep.mubr.msk.f32.mxu0 %vm291_vm0, %v292_v4  ;;  %v37_v21 = vlaneseq  ;;  %v34_v24 = vstv %s392_s0  ;;  %vm140_vm2 = vcmask 523264  }
   0x2   :  { %v268_v5 = vpack.c.bf16 %v30_v2, %v29_v1  ;;  %v32_v6 = vld [vmem:[%s389_s2 + $0x18] sm:$0xff]  ;;  %273 = vmatprep.subr.bf16.mxu1 %v290_v0  ;;  %264 = vmatprep.mubr.msk.f32.mxu1 %vm291_vm0, %v292_v4  ;;  %v28_v8 = vld [vmem:[%s390_s1] sm:$0xff]  ;;  %v126_v10 = vld [vmem:[%s391_s5 + $0x8] sm:$0xff] }
   0x3   :  { %v271_v7 = vpack.c.bf16 %v32_v6, %v31_v3  ;;  %v125_v9 = vld [vmem:[%s391_s5] sm:$0xff]  ;;  %v127_v12 = vld [vmem:[%s391_s5 + $0x10] sm:$0xff]  ;;  %v128_v13 = vld [vmem:[%s391_s5 + $0x18] sm:$0xff]  ;;  %v38_v22 = vshrl.u32 %v37_v21, 7 }
   0x4   :  { %269 = vmatpush3.bf16.msra.mxu0 %v268_v5  ;;  %v274_v11 = vpack.c.bf16 %v126_v10, %v125_v9  ;;  %v277_v14 = vpack.c.bf16 %v128_v13, %v127_v12  ;;  %v129_v15 = vld [vmem:[%s391_s5 + $0x20] sm:$0xff]  ;;  %v130_v16 = vld [vmem:[%s391_s5 + $0x28] sm:$0xff]  ;;  %v131_v18 = vld [vmem:[%s391_s5 + $0x30] sm:$0xff] }
   0x5   :  { %270 = vmatprep.subr.bf16.mxu0 %v290_v0  ;;  %v280_v17 = vpack.c.bf16 %v130_v16, %v129_v15  ;;  %v132_v19 = vld [vmem:[%s391_s5 + $0x38] sm:$0xff]  ;;  %v33_v23 = vld [vmem:[%s393_s3] sm:$0x1]  ;;  %v39_v26 = vsub.s32 0, %v38_v22 }
   0x6   :  { %275 = vmatpush3.bf16.msra.mxu1 %v274_v11  ;;  %v283_v20 = vpack.c.bf16 %v132_v19, %v131_v18  ;;  %v35_v25 = vmul.f32 %v34_v24, %v33_v23  ;;  %v220_v29 = vld [vmem:[%s394_s4] ss:$0 sm:$0xff] }
   0x7   :  { %276 = vmatprep.subr.bf16.mxu1 %v290_v0  ;;  %v221_v34 = vld [vmem:[%s395_s6] ss:$0 sm:$0xff] }
   0x8   :  { %272 = vmatpush3.bf16.msra.mxu0 %v271_v7  ;;  %v40_v27 = vrot.slane %v35_v25, %v39_v26 }
   0xa   :  { %278 = vmatpush3.bf16.msra.mxu1 %v277_v14 }
   0xb   :  { %246 = vmatmul.mubr.msk.f32.vlgmr.msra.gmra.mrb[0].mxu0 %vm42_vm1, %v28_v8  ;;  %279 = vmatprep.subr.bf16.mxu1 %v290_v0 }
   0xe   :  { %281 = vmatpush3.bf16.msra.mxu1 %v280_v17 }
   0xf   :  { %282 = vmatprep.subr.bf16.mxu1 %v290_v0 }
  0x12   :  { %284 = vmatpush3.bf16.msra.mxu1 %v283_v20 }
  0xde   :  { %v112_v28 = vpop.f32.mrb[0].mxu0 }
  0xdf   :  { %v113_v30 = vadd.f32 %v112_v28, %v40_v27  ;;  %v247_v31 = vpop.f32.mrb[1].mxu0 }
  0xe1   :  { %v123_v32 = vadd.f32 %v220_v29, %v113_v30 }
  0xe3   :  { %288 = vtanh.f32 %v123_v32 }
  0xed   :  { %v289_v33 = vpop.eup %288 }
  0xee   :  { %265 = vmatmul.mubr.msk.f32.vlgmr.msra.gmra.mrb[0].mxu1 %vm140_vm2, %v289_v33 }
 0x1c1   :  { %v210_v35 = vpop.f32.mrb[0].mxu1 }
 0x1c2   :  { %v211_v36 = vadd.f32 %v221_v34, %v210_v35  ;;  %v266_v37 = vpop.f32.mrb[1].mxu1 }
 0x1c4   :  { %214 = vst.msk [vmem:[%s396_s7] sm:$0xff] %vm42_vm1, %v211_v36 }

</bundles_post_ra>
